<compile_context>
chip_gen: v6e
topology: v6e:2x2x1
jax: 0.10.0
libtpu: 0.0.40
codegen_flags: <defaults>
</compile_context>

<pallas_src>
import math

import jax
import jax.numpy as jnp
from jax.experimental import pallas as pl
from jax.experimental.pallas import tpu as pltpu


# Per-tile byte target for the x tile.  3 streams (x, pe, out) x 2 pipeline
# buffers x ~2 MiB ≈ 12 MiB, under the 16 MiB scoped-VMEM default on v5e and
# well under v6e (32 MiB scoped / 128 physical) and v7x (64 MiB physical),
# while still large enough to amortize the ~0.35 us per-grid-step overhead.
_TARGET_TILE_BYTES = 2 * 1024 * 1024


def make_positional_encoding_table(dim: int, max_len: int = 512) -> jnp.ndarray:
    """Deterministic sinusoidal table, identical to the PyTorch __init__."""
    assert dim % 2 == 0, "PositionalEncoding requires an even model dim"
    position = jnp.arange(0, max_len, dtype=jnp.float32)[:, None]           # (max_len, 1)
    div_term = jnp.exp(
        jnp.arange(0, dim, 2, dtype=jnp.float32) * -(math.log(10000.0) / dim)
    )                                                                        # (dim/2,)
    angles = position * div_term                                             # (max_len, dim/2)
    pe = jnp.zeros((max_len, dim), dtype=jnp.float32)
    pe = pe.at[:, 0::2].set(jnp.sin(angles))
    pe = pe.at[:, 1::2].set(jnp.cos(angles))
    return pe                                                                # (max_len, dim)


# --------------------------------------------------------------------------
# Kernels
# --------------------------------------------------------------------------

def _add_pe_seq_tiled_kernel(x_ref, pe_ref, o_ref):
    # Batch dim is squeezed out by the BlockSpec: all refs are (TL, D).
    o_ref[...] = x_ref[...] + pe_ref[...]


def _add_pe_lane_dense_kernel(x_ref, pe_ref, o_ref):
    # x_ref/o_ref: (B, TC) with the (l, d) axes fused into lane-dense columns.
    # pe_ref: (1, TC), broadcast over the batch (sublane) axis.
    o_ref[...] = x_ref[...] + pe_ref[...]


# --------------------------------------------------------------------------
# Tile-size selection
# --------------------------------------------------------------------------

def _round_down(v: int, m: int) -> int:
    return (v // m) * m


def _choose_seq_tile(L: int, D: int, itemsize: int) -> int:
    rows = max(1, _TARGET_TILE_BYTES // (D * itemsize))
    tl = min(L, rows)
    if tl < L:
        tl = max(8, _round_down(tl, 8))   # sublane-aligned tile
        tl = min(tl, L)                   # L < 8 -> fall back to the full dim
    return tl


def _choose_lane_tile(B: int, LD: int, itemsize: int) -> int:
    cols = max(128, _TARGET_TILE_BYTES // (B * itemsize))
    tc = min(LD, cols)
    if tc < LD:
        tc = max(128, _round_down(tc, 128))  # lane-aligned tile
        tc = min(tc, LD)
    return tc


# --------------------------------------------------------------------------
# Forward paths
# --------------------------------------------------------------------------

def _forward_seq_tiled(x, pe_table, donate_x):
    # x: (B, L, D) with D a multiple of 128.  pe_table: (max_len, D), x.dtype.
    B, L, D = x.shape
    tl = _choose_seq_tile(L, D, x.dtype.itemsize)
    grid = (B, pl.cdiv(L, tl))
    return pl.pallas_call(
        _add_pe_seq_tiled_kernel,
        out_shape=jax.ShapeDtypeStruct((B, L, D), x.dtype),
        grid_spec=pltpu.PrefetchScalarGridSpec(
            num_scalar_prefetch=0,
            grid=grid,
            in_specs=[
                # batch dim squeezed -> kernel sees a (tl, D) ref
                pl.BlockSpec((None, tl, D), lambda b, i: (b, i, 0)),
                # window the first L rows of the full table (no wrapper slice/copy)
                pl.BlockSpec((tl, D), lambda b, i: (i, 0)),
            ],
            out_specs=pl.BlockSpec((None, tl, D), lambda b, i: (b, i, 0)),
        ),
        compiler_params=pltpu.CompilerParams(
            # Purely elementwise: both grid axes are independent, so v7x's two
            # TensorCores each take half the grid (neutral on v5e/v6e).
            dimension_semantics=("parallel", "parallel"),
        ),
        input_output_aliases={0: 0} if donate_x else {},
    )(x, pe_table)


def _forward_lane_dense(x, pe_l, donate_x):
    # x: (B, L, D) with D not a multiple of 128 (e.g. D=32).  pe_l: (L, D), x.dtype.
    # Fuse (L, D) into one lane axis so stores are full-width unmasked vst
    # instead of masked partial stores — the biggest lever for this mem-bound op.
    B, L, D = x.shape
    LD = L * D
    x2 = x.reshape(B, LD)
    pe2 = pe_l.reshape(1, LD)
    tc = _choose_lane_tile(B, LD, x.dtype.itemsize)
    grid = (pl.cdiv(LD, tc),)
    out2 = pl.pallas_call(
        _add_pe_lane_dense_kernel,
        out_shape=jax.ShapeDtypeStruct((B, LD), x.dtype),
        grid_spec=pltpu.PrefetchScalarGridSpec(
            num_scalar_prefetch=0,
            grid=grid,
            in_specs=[
                pl.BlockSpec((B, tc), lambda c: (0, c)),
                pl.BlockSpec((1, tc), lambda c: (0, c)),
            ],
            out_specs=pl.BlockSpec((B, tc), lambda c: (0, c)),
        ),
        compiler_params=pltpu.CompilerParams(
            dimension_semantics=("parallel",),
        ),
        input_output_aliases={0: 0} if donate_x else {},
    )(x2, pe2)
    return out2.reshape(B, L, D)


def positional_encoding_forward(
    x: jnp.ndarray,
    pe_table: jnp.ndarray,
    *,
    donate_x: bool = False,
    force_pallas: bool = False,
    min_pallas_bytes: int = 1 << 16,
) -> jnp.ndarray:
    """x: (B, L, D), pe_table: (max_len, D) float32 -> (B, L, D) in x.dtype."""
    B, L, D = x.shape
    max_len, d_table = pe_table.shape
    assert d_table == D, f"pe table dim {d_table} != model dim {D}"
    assert L <= max_len, f"sequence length {L} exceeds max_len {max_len}"

    # Cast once so the in-kernel add stays in x.dtype (halves pe traffic for
    # bf16 and avoids an f32 promotion / dtype-mismatched store).
    pe = pe_table.astype(x.dtype)

    # Kilobyte-scale inputs: the fixed pallas_call launch overhead dominates;
    # let XLA fuse a plain elementwise add instead.
    if not force_pallas and x.size * x.dtype.itemsize < min_pallas_bytes:
        return x + pe[None, :L, :]

    # TODO(synk): on v7x the pe DMA stream could be dropped entirely by
    # generating pe in-kernel (broadcasted iota + sin/cos on the idle EUP).
    if D % 128 == 0:
        return _forward_seq_tiled(x, pe, donate_x)
    return _forward_lane_dense(x, pe[:L], donate_x)


if __name__ == "__main__":
    max_len = 512

    # Demo shape from the module: batch=2, seq=8, hidden=32 -> lane-dense path.
    B, L, D = 2, 8, 32
    key = jax.random.PRNGKey(0)
    x = jax.random.normal(key, (B, L, D), dtype=jnp.float32)
    pe_table = make_positional_encoding_table(D, max_len)

    out = positional_encoding_forward(x, pe_table, force_pallas=True)
    out = jax.block_until_ready(out)
    ref = x + pe_table[None, :L, :]
    assert out.shape == (B, L, D)
    assert jnp.allclose(out, ref, atol=1e-6, rtol=1e-6), "lane-dense path mismatch"

    # Also exercise the seq-tiled path (D a multiple of 128), still small.
    B2, L2, D2 = 2, 16, 128
    x2 = jax.random.normal(jax.random.PRNGKey(0), (B2, L2, D2), dtype=jnp.float32)
    pe_table2 = make_positional_encoding_table(D2, max_len)
    out2 = positional_encoding_forward(x2, pe_table2, force_pallas=True)
    out2 = jax.block_until_ready(out2)
    ref2 = x2 + pe_table2[None, :L2, :]
    assert jnp.allclose(out2, ref2, atol=1e-6, rtol=1e-6), "seq-tiled path mismatch"

    print("KERNEL_OK")
</pallas_src>

<mosaic_0001>
module attributes {stable_mosaic.version = 11 : i64} {
  func.func @_add_pe_lane_dense_kernel(%arg0: i32, %arg1: memref<2x256xf32, #tpu.memory_space<vmem>>, %arg2: memref<1x256xf32, #tpu.memory_space<vmem>>, %arg3: memref<2x256xf32, #tpu.memory_space<vmem>>) attributes {dimension_semantics = [#tpu.dimension_semantics<parallel>], iteration_bounds = array<i64: 1>, scalar_prefetch = 0 : i64, scratch_operands = 0 : i64, tpu.core_type = #tpu.core_type<tc>, window_params = [{transform_indices = @transform_0, window_bounds = array<i64: 2, 256>}, {transform_indices = @transform_1, window_bounds = array<i64: 1, 256>}, {transform_indices = @transform_2, window_bounds = array<i64: 2, 256>}]} {
    %c0 = arith.constant 0 : index
    %c0_0 = arith.constant 0 : index
    %0 = vector.load %arg1[%c0, %c0_0] : memref<2x256xf32, #tpu.memory_space<vmem>>, vector<2x256xf32>
    %c0_1 = arith.constant 0 : index
    %c0_2 = arith.constant 0 : index
    %1 = vector.load %arg2[%c0_1, %c0_2] : memref<1x256xf32, #tpu.memory_space<vmem>>, vector<1x256xf32>
    %2 = vector.broadcast %1 : vector<1x256xf32> to vector<2x256xf32>
    %3 = arith.addf %0, %2 : vector<2x256xf32>
    %c0_3 = arith.constant 0 : index
    %c0_4 = arith.constant 0 : index
    %4 = vector.load %arg3[%c0_3, %c0_4] : memref<2x256xf32, #tpu.memory_space<vmem>>, vector<2x256xf32>
    tpu.vector_store %arg3[%c0_3, %c0_4], %3 {strides = array<i32>} : memref<2x256xf32, #tpu.memory_space<vmem>>, vector<2x256xf32>,
    return
  }
  func.func @transform_0(%arg0: i32) -> (i32, i32) {
    %c0_i32 = arith.constant 0 : i32
    %c0_i32_0 = arith.constant 0 : i32
    return %c0_i32, %arg0 : i32, i32
  }
  func.func @transform_1(%arg0: i32) -> (i32, i32) {
    %c0_i32 = arith.constant 0 : i32
    %c0_i32_0 = arith.constant 0 : i32
    return %c0_i32, %arg0 : i32, i32
  }
  func.func @transform_2(%arg0: i32) -> (i32, i32) {
    %c0_i32 = arith.constant 0 : i32
    %c0_i32_0 = arith.constant 0 : i32
    return %c0_i32, %arg0 : i32, i32
  }
}

</mosaic_0001>

<bundles_post_ra>
// kernel: tpu_custom_call.1
= control target key start
LH: loop header
LB: loop body
LE: loop exit
PB: predicated region body
PF: predicated region fallthrough
CT: control target
= control target key end

     0   :  { %7 = vsyncpa [#allocation3], 0  ;;  %s172_s0 = inlined_call_operand.hbm [shape: f32[2,256], index: 0, kind: input, shape index: {}]   ;;  %s173_s1 = inlined_call_operand.hbm [shape: f32[1,256], index: 1, kind: input, shape index: {}]   ;;  %s174_s2 = inlined_call_operand.hbm [shape: f32[2,256], index: 2, kind: output, shape index: {}]  }
   0x1   :  { %8 = vsyncpa [#allocation6], 0 }
   0x2   :  { %9 = vsyncpa [#allocation4], 0  ;;  %s144_s9 = smov [#allocation2]   ;;  %s145_s11 = smov [#allocation5]  }
   0x3   :  { %s16_s10 = sshll.u32 %s144_s9, 4  ;;  %s26_s12 = sshll.u32 %s145_s11, 4  ;;  %s17_s10 = int_to_ptr.vmem [resolvable:$true] %s16_s10  ;;  %s27_s12 = int_to_ptr.vmem [resolvable:$true] %s26_s12 }
   0x4   :  { %s86_s13 = scalar_lea.vmem %s17_s10, 64  ;;  %p91_p1 = scmp.lt.s32.totalorder %s17_s10, %s17_s10 }
   0x5   :  { %p87_p0 = scmp.ne.s32.totalorder %s17_s10, %s86_s13  ;;  %p92_p2 = scmp.lt.s32.totalorder %s86_s13, %s86_s13 }
   0x7   :  { %p93_p3 = por %p92_p2, %p91_p1 }
   0x9   :  { %p94_p4 = pnand %p93_p3, %p87_p0 }
   0xb   :  { %97 = shalt.err (!%p94_p4)
}
   0xc   :  { %19 = dma.hbm_to_vmem [thread:$0]  %s172_s0, 64, %s17_s10, [#allocation3]  }
   0xd   :  { %s106_s16 = scalar_lea.vmem %s27_s12, 32  ;;  %p111_p6 = scmp.lt.s32.totalorder %s27_s12, %s27_s12 }
   0xe   :  { %p107_p5 = scmp.ne.s32.totalorder %s27_s12, %s106_s16  ;;  %p112_p7 = scmp.lt.s32.totalorder %s106_s16, %s106_s16 }
  0x10   :  { %p113_p8 = por %p112_p7, %p111_p6 }
  0x12   :  { %p114_p9 = pnand %p113_p8, %p107_p5 }
  0x14   :  { %117 = shalt.err (!%p114_p9)
}
  0x15   :  { %29 = dma.hbm_to_vmem [thread:$0]  %s173_s1, 32, %s27_s12, [#allocation6]  }
  0x16   :  { %138 = dma.done.wait [#allocation3], 64  }
  0x17   :  { %139 = vsyncadd [#allocation3], 4294967232 }
  0x18   :  { %140 = dma.done.wait [#allocation6], 32  }
  0x19   :  { %141 = vsyncadd [#allocation6], 4294967264  ;;  %v39_v0 = vlaneseq  ;;  %v146_v1 = vmov 1983009808   ;;  %v37_v7 = vld [vmem:[#allocation5] sm:$0x3] }
  0x1a   :  { %v49_v2 = vunpack.c.l.s4 %v146_v1  ;;  %v36_v12 = vld [vmem:[#allocation2] sm:$0xf]  ;;  %s147_s0 = smov [#allocation7]  }
  0x1b   :  { %v40_v3 = vshrl.u32 %v39_v0, 7  ;;  %s64_s19 = sshll.u32 %s147_s0, 4  ;;  %s65_s19 = int_to_ptr.vmem [resolvable:$true] %s64_s19 }
  0x1c   :  { %v50_v6 = vunpack.c.0.s8 %v49_v2  ;;  %s118_s1 = scalar_lea.vmem %s65_s19, 64  ;;  %p123_p11 = scmp.lt.s32.totalorder %s65_s19, %s65_s19 }
  0x1d   :  { %v41_v4 = vsub.s32 0, %v40_v3  ;;  %v45_v5 = vsub.s32 1, %v40_v3  ;;  %p119_p10 = scmp.ne.s32.totalorder %s65_s19, %s118_s1  ;;  %p124_p12 = scmp.lt.s32.totalorder %s118_s1, %s118_s1 }
  0x1e   :  { %v53_v10 = vsub.s32 %v50_v6, %v40_v3 }
  0x1f   :  { %v42_v8 = vrot.slane %v37_v7, %v41_v4  ;;  %v46_v9 = vrot.slane %v37_v7, %v45_v5  ;;  %p125_p13 = por %p124_p12, %p123_p11 }
  0x21   :  { %v47_v11 = vcombine.low %v42_v8, %v46_v9  ;;  %p126_p0 = pnand %p125_p13, %p119_p10 }
  0x23   :  { %v54_v13 = vrot.slane %v47_v11, %v53_v10 }
  0x25   :  { %v56_v14 = vadd.f32 %v54_v13, %v36_v12 }
  0x27   :  { %57 = vst [vmem:[#allocation7] sm:$0xf] %v56_v14 }
  0x28   :  { %129 = shalt.err (!%p126_p0)
}
  0x29   :  { %67 = dma.vmem_to_hbm [thread:$0]  %s65_s19, 64, %s174_s2, [#allocation4]  }
  0x2a   :  { %142 = dma.done.wait [#allocation4], 64  }
  0x2b   :  { %143 = vsyncadd [#allocation4], 4294967232 }
  0x2c   :  { %71 = vsyncpa [#allocation3], 1 }
  0x2d   :  { %72 = vsyncpa [#allocation6], 1 }
  0x2e   :  { %73 = vsyncpa [#allocation4], 1 }

</bundles_post_ra>
